<compile_context>
chip_gen: v6e
topology: v6e:2x2x1
jax: 0.10.0
libtpu: 0.0.40
codegen_flags: <defaults>
</compile_context>

<pallas_src>
import jax
import jax.numpy as jnp
from jax.experimental import pallas as pl
from jax.experimental.pallas import tpu as pltpu


# ---------------------------------------------------------------------------
# Kernel: per (batch tile, spatial tile) block, normalize over the channel axis.
# ---------------------------------------------------------------------------
def _feature_l2norm_kernel(x_ref, o_ref):
    """x_ref / o_ref: (Nb, C, T) — C on sublanes, T (spatial) lane-dense."""
    x = x_ref[...]                                     # (Nb, C, T) input dtype
    xf = x.astype(jnp.float32)
    ssq = jnp.sum(xf * xf, axis=1, keepdims=True)      # (Nb, 1, T) f32, XLU reduce
    inv = jax.lax.rsqrt(ssq + 1e-6)                    # EUP rsqrt
    if o_ref.dtype == jnp.float32:
        o_ref[...] = xf * inv
    else:
        # Avoid materializing an f32 (Nb, C, T) result for narrow dtypes:
        # cast inv down once and scale in the input dtype.
        o_ref[...] = (x * inv.astype(x.dtype)).astype(o_ref.dtype)


# ---------------------------------------------------------------------------
# Wrapper
# ---------------------------------------------------------------------------
def feature_l2_norm(feature, *, target_block_bytes=2 * 1024 * 1024):
    """L2-normalize `feature` over axis 1 (channels).  feature: (N, C, ...)."""
    orig_shape = feature.shape
    N, C = orig_shape[0], orig_shape[1]
    S = 1
    for d in orig_shape[2:]:
        S *= d
    x = feature.reshape(N, C, S)           # contiguous merge of trailing dims

    dtype_size = jnp.dtype(feature.dtype).itemsize

    # Lane-dense spatial axis: pad up to a multiple of 128 (zero columns
    # normalize to zero, so padding is harmless) and slice off at the end.
    S_pad = max(128, ((S + 127) // 128) * 128)
    if S_pad != S:
        x = jnp.pad(x, ((0, 0), (0, 0), (0, S_pad - S)))

    # --- byte-budgeted tile selection --------------------------------------
    row_bytes = C * S_pad * dtype_size                 # one full sample
    if row_bytes <= target_block_bytes:
        # Full spatial extent -> one fully contiguous DMA per grid step.
        # Widen over batch to hit the byte target (Nb must divide N).
        T = S_pad
        max_nb = max(1, target_block_bytes // row_bytes)
        Nb = 1
        for d in range(1, N + 1):
            if N % d == 0 and d <= max_nb:
                Nb = d
    else:
        # Sample too big: tile spatially with the largest multiple-of-128
        # divisor of S_pad that fits the byte budget (floor of 128).
        Nb = 1
        k = S_pad // 128
        t_units = 1
        for d in range(1, k + 1):
            if k % d == 0 and C * (d * 128) * dtype_size <= target_block_bytes:
                t_units = d
        T = t_units * 128

    grid = (N // Nb, S_pad // T)

    # Explicit scoped-VMEM sizing: double-buffered in + out plus f32 temps
    # (xf, squares/partials, scaled result), with headroom, capped for v7x.
    block_elems = Nb * C * T
    io_bytes = 2 * 2 * block_elems * dtype_size
    tmp_bytes = 3 * block_elems * 4
    vmem_limit = int(min(max(io_bytes + tmp_bytes + (2 << 20), 16 << 20), 64 << 20))

    out = pl.pallas_call(
        _feature_l2norm_kernel,
        out_shape=jax.ShapeDtypeStruct((N, C, S_pad), feature.dtype),
        grid_spec=pltpu.PrefetchScalarGridSpec(
            num_scalar_prefetch=0,
            grid=grid,
            in_specs=[pl.BlockSpec((Nb, C, T), lambda n, s: (n, 0, s))],
            out_specs=pl.BlockSpec((Nb, C, T), lambda n, s: (n, 0, s)),
        ),
        compiler_params=pltpu.CompilerParams(
            dimension_semantics=("parallel", "parallel"),
            vmem_limit_bytes=vmem_limit),
    )(x)

    if S_pad != S:
        out = out[:, :, :S]
    return out.reshape(orig_shape)


# ---------------------------------------------------------------------------
# Pure-JAX reference (mirrors the PyTorch forward exactly)
# ---------------------------------------------------------------------------
def feature_l2_norm_ref(feature):
    eps = 1e-6
    norm = jnp.sqrt(jnp.sum(jnp.square(feature), axis=1, keepdims=True) + eps)
    return feature / norm


if __name__ == "__main__":
    key = jax.random.PRNGKey(0)
    # Small deterministic NCHW input, as the PyTorch module expects: (N, C, H, W)
    x = jax.random.normal(key, (2, 4, 16, 16), jnp.float32)

    out = jax.block_until_ready(feature_l2_norm(x))
    ref = feature_l2_norm_ref(x)

    assert out.shape == x.shape, out.shape
    assert bool(jnp.all(jnp.isfinite(out)))
    assert bool(jnp.allclose(out, ref, rtol=1e-5, atol=1e-6)), (
        float(jnp.max(jnp.abs(out - ref))))

    # Non-128-multiple spatial extent exercises the zero-pad + slice path.
    x2 = jax.random.normal(jax.random.PRNGKey(1), (2, 3, 10, 10), jnp.float32)
    out2 = jax.block_until_ready(feature_l2_norm(x2))
    ref2 = feature_l2_norm_ref(x2)
    assert out2.shape == x2.shape
    assert bool(jnp.allclose(out2, ref2, rtol=1e-5, atol=1e-6)), (
        float(jnp.max(jnp.abs(out2 - ref2))))

    print("KERNEL_OK")
</pallas_src>

<mosaic_0001>
module attributes {stable_mosaic.version = 11 : i64} {
  func.func @_feature_l2norm_kernel(%arg0: i32, %arg1: i32, %arg2: memref<2x4x256xf32, #tpu.memory_space<vmem>>, %arg3: memref<2x4x256xf32, #tpu.memory_space<vmem>>) attributes {dimension_semantics = [#tpu.dimension_semantics<parallel>, #tpu.dimension_semantics<parallel>], iteration_bounds = array<i64: 1, 1>, scalar_prefetch = 0 : i64, scratch_operands = 0 : i64, tpu.core_type = #tpu.core_type<tc>, window_params = [{transform_indices = @transform_0, window_bounds = array<i64: 2, 4, 256>}, {transform_indices = @transform_1, window_bounds = array<i64: 2, 4, 256>}]} {
    %c0 = arith.constant 0 : index
    %c0_0 = arith.constant 0 : index
    %c0_1 = arith.constant 0 : index
    %0 = vector.load %arg2[%c0, %c0_0, %c0_1] : memref<2x4x256xf32, #tpu.memory_space<vmem>>, vector<2x4x256xf32>
    %1 = arith.mulf %0, %0 : vector<2x4x256xf32>
    %cst = arith.constant dense<0.000000e+00> : vector<2x256xf32>
    %2 = vector.multi_reduction <add>, %1, %cst [1] : vector<2x4x256xf32> to vector<2x256xf32>
    %3 = vector.shape_cast %2 : vector<2x256xf32> to vector<2x1x256xf32>
    %cst_2 = arith.constant 9.99999997E-7 : f32
    %4 = vector.broadcast %cst_2 : f32 to vector<2x1x256xf32>
    %5 = arith.addf %3, %4 : vector<2x1x256xf32>
    %6 = math.rsqrt %5 : vector<2x1x256xf32>
    %7 = vector.broadcast %6 : vector<2x1x256xf32> to vector<2x4x256xf32>
    %8 = arith.mulf %0, %7 : vector<2x4x256xf32>
    %c0_3 = arith.constant 0 : index
    %c0_4 = arith.constant 0 : index
    %c0_5 = arith.constant 0 : index
    %9 = vector.load %arg3[%c0_3, %c0_4, %c0_5] : memref<2x4x256xf32, #tpu.memory_space<vmem>>, vector<2x4x256xf32>
    tpu.vector_store %arg3[%c0_3, %c0_4, %c0_5], %8 {strides = array<i32>} : memref<2x4x256xf32, #tpu.memory_space<vmem>>, vector<2x4x256xf32>,
    return
  }
  func.func @transform_0(%arg0: i32, %arg1: i32) -> (i32, i32, i32) {
    %c0_i32 = arith.constant 0 : i32
    %c0_i32_0 = arith.constant 0 : i32
    return %arg0, %c0_i32, %arg1 : i32, i32, i32
  }
  func.func @transform_1(%arg0: i32, %arg1: i32) -> (i32, i32, i32) {
    %c0_i32 = arith.constant 0 : i32
    %c0_i32_0 = arith.constant 0 : i32
    return %arg0, %c0_i32, %arg1 : i32, i32, i32
  }
}

</mosaic_0001>

<bundles_post_ra>
// kernel: tpu_custom_call.1
= control target key start
LH: loop header
LB: loop body
LE: loop exit
PB: predicated region body
PF: predicated region fallthrough
CT: control target
= control target key end

     0   :  { %6 = vsyncpa [#allocation3], 0  ;;  %s181_s0 = inlined_call_operand.hbm [shape: f32[2,4,256], index: 0, kind: input, shape index: {}]   ;;  %s182_s1 = inlined_call_operand.hbm [shape: f32[2,4,256], index: 1, kind: output, shape index: {}]  }
   0x1   :  { %7 = vsyncpa [#allocation4], 0  ;;  %s155_s6 = smov [#allocation2]  }
   0x2   :  { %s13_s7 = sshll.u32 %s155_s6, 4  ;;  %s14_s7 = int_to_ptr.vmem [resolvable:$true] %s13_s7 }
   0x3   :  { %s119_s8 = scalar_lea.vmem %s14_s7, 256  ;;  %p124_p1 = scmp.lt.s32.totalorder %s14_s7, %s14_s7 }
   0x4   :  { %p120_p0 = scmp.ne.s32.totalorder %s14_s7, %s119_s8  ;;  %p125_p2 = scmp.lt.s32.totalorder %s119_s8, %s119_s8 }
   0x6   :  { %p126_p3 = por %p125_p2, %p124_p1 }
   0x8   :  { %p127_p4 = pnand %p126_p3, %p120_p0 }
   0xa   :  { %130 = shalt.err (!%p127_p4)
}
   0xb   :  { %s156_s9 = smov 128   ;;  %s157_s10 = smov 8  }
   0xc   :  { %19 = dma.hbm_to_vmem [thread:$0]  %s181_s0, 256, %s14_s7, [#allocation3], %s156_s9, %s156_s9, %s157_s10  }
   0xd   :  { %151 = dma.done.wait [#allocation3], 256  }
   0xe   :  { %152 = vsyncadd [#allocation3], 4294967040  ;;  %v23_v0 = vld [vmem:[#allocation2] sm:$0xff]  ;;  %vm33_vm0 = vcmask 1043456   ;;  %v24_v1 = vld [vmem:[#allocation2 + $0x8] sm:$0xff]  ;;  %s158_s0 = smov [#allocation5]  }
   0xf   :  { %v25_v2 = vmul.f32 %v23_v0, %v23_v0  ;;  %v26_v3 = vmul.f32 %v24_v1, %v24_v1  ;;  %s87_s13 = sshll.u32 %s158_s0, 4  ;;  %s88_s13 = int_to_ptr.vmem [resolvable:$true] %s87_s13 }
  0x10   :  { %s131_s14 = scalar_lea.vmem %s88_s13, 256  ;;  %p136_p6 = scmp.lt.s32.totalorder %s88_s13, %s88_s13 }
  0x11   :  { %v29_v4 = vcombine.high %v25_v2, %v25_v2  ;;  %v34_v5 = vsel %vm33_vm0, %v25_v2, 0.0  ;;  %v30_v6 = vcombine.high %v26_v3, %v26_v3  ;;  %v48_v7 = vsel %vm33_vm0, %v26_v3, 0.0  ;;  %p132_p5 = scmp.ne.s32.totalorder %s88_s13, %s131_s14  ;;  %p137_p7 = scmp.lt.s32.totalorder %s131_s14, %s131_s14 }
  0x12   :  { %v35_v8 = vrot.slane %v34_v5, 4  ;;  %v49_v9 = vrot.slane %v48_v7, 4 }
  0x13   :  { %v41_v10 = vsel %vm33_vm0, %v29_v4, 0.0  ;;  %v55_v11 = vsel %vm33_vm0, %v30_v6, 0.0  ;;  %p138_p8 = por %p137_p7, %p136_p6 }
  0x14   :  { %v36_v12 = vadd.f32 %v35_v8, %v34_v5  ;;  %v42_v13 = vrot.slane %v41_v10, 4  ;;  %v50_v14 = vadd.f32 %v49_v9, %v48_v7  ;;  %v56_v15 = vrot.slane %v55_v11, 4 }
  0x15   :  { %p139_p9 = pnand %p138_p8, %p132_p5 }
  0x16   :  { %v37_v16 = vrot.slane %v36_v12, 2  ;;  %v43_v17 = vadd.f32 %v42_v13, %v41_v10  ;;  %v51_v18 = vrot.slane %v50_v14, 2  ;;  %v57_v19 = vadd.f32 %v56_v15, %v55_v11 }
  0x18   :  { %v38_v20 = vadd.f32 %v37_v16, %v36_v12  ;;  %v44_v21 = vrot.slane %v43_v17, 2  ;;  %v52_v22 = vadd.f32 %v51_v18, %v50_v14  ;;  %v58_v23 = vrot.slane %v57_v19, 2 }
  0x1a   :  { %v39_v24 = vrot.slane %v38_v20, 1  ;;  %v45_v25 = vadd.f32 %v44_v21, %v43_v17  ;;  %v53_v26 = vrot.slane %v52_v22, 1  ;;  %v59_v27 = vadd.f32 %v58_v23, %v57_v19 }
  0x1c   :  { %v40_v28 = vadd.f32 %v39_v24, %v38_v20  ;;  %v46_v29 = vrot.slane %v45_v25, 1  ;;  %v54_v30 = vadd.f32 %v53_v26, %v52_v22  ;;  %v60_v31 = vrot.slane %v59_v27, 1 }
  0x1e   :  { %v47_v32 = vadd.f32 %v46_v29, %v45_v25  ;;  %v62_v33 = vadd.f32 1e-06, %v40_v28  ;;  %v61_v34 = vadd.f32 %v60_v31, %v59_v27  ;;  %v64_v35 = vadd.f32 1e-06, %v54_v30 }
  0x20   :  { %v63_v36 = vadd.f32 1e-06, %v47_v32  ;;  %103 = vrsqrt.f32 %v62_v33  ;;  %v65_v37 = vadd.f32 1e-06, %v61_v34 }
  0x21   :  { %105 = vrsqrt.f32 %v64_v35 }
  0x22   :  { %107 = vrsqrt.f32 %v63_v36 }
  0x23   :  { %109 = vrsqrt.f32 %v65_v37 }
  0x2d   :  { %v104_v38 = vpop.eup %103 }
  0x2e   :  { %v106_v39 = vpop.eup %105 }
  0x2f   :  { %v108_v40 = vpop.eup %107 }
  0x30   :  { %v110_v41 = vpop.eup %109  ;;  %v74_v42 = vcombine.low %v104_v38, %v108_v40 }
  0x31   :  { %v75_v43 = vcombine.low %v106_v39, %v110_v41 }
  0x32   :  { %v78_v44 = vmul.f32 %v74_v42, %v23_v0 }
  0x33   :  { %v79_v45 = vmul.f32 %v75_v43, %v24_v1 }
  0x34   :  { %80 = vst [vmem:[#allocation5] sm:$0xff] %v78_v44 }
  0x35   :  { %81 = vst [vmem:[#allocation5 + $0x8] sm:$0xff] %v79_v45 }
  0x36   :  { %142 = shalt.err (!%p139_p9)
}
  0x37   :  { %93 = dma.vmem_to_hbm [thread:$0]  %s88_s13, 256, %s182_s1, [#allocation4], %s156_s9, %s156_s9, %s157_s10  }
  0x38   :  { %153 = dma.done.wait [#allocation4], 256  }
  0x39   :  { %154 = vsyncadd [#allocation4], 4294967040 }
  0x3a   :  { %97 = vsyncpa [#allocation3], 1 }
  0x3b   :  { %98 = vsyncpa [#allocation4], 1 }

</bundles_post_ra>
